<compile_context>
chip_gen: v6e
topology: v6e:2x2x1
jax: 0.10.0
libtpu: 0.0.40
codegen_flags: <defaults>
</compile_context>

<pallas_src>
import functools
import math

import jax
import jax.numpy as jnp
from jax.experimental import pallas as pl
from jax.experimental.pallas import tpu as pltpu


def _round_up(v, m):
    return (v + m - 1) // m * m


def _choose_tiles(n):
    """Row / reduction tile sizes, clamped so small graphs are not over-padded."""
    n128 = _round_up(n, 128)
    tm = min(512, n128)    # row tile (multiple of 128 -> MXU/sublane friendly)
    tk = min(1024, n128)   # reduction tile (adj DMA panel width)
    return tm, tk


def _stage1_row_tile(n_rows_pad):
    for cand in (512, 256, 128):
        if n_rows_pad % cand == 0:
            return cand
    return n_rows_pad  # unreachable: n_rows_pad is always a multiple of 128


def prep_adjacency(adj, tm, tk):
    """Pad adj rows to a multiple of tm, cols to a multiple of tk, cast to int8.

    The int8 storage is exact for {0, 1} adjacency entries (the only values the
    GCN module produces) and halves HBM traffic vs bf16; the kernel upcasts the
    (tm, tk) tile to bf16 right before the MXU dot.
    """
    n = adj.shape[0]
    n_rows_pad = _round_up(n, tm)
    n_cols_pad = _round_up(n, tk)
    return jnp.pad(adj.astype(jnp.int8),
                   ((0, n_rows_pad - n), (0, n_cols_pad - n)))


# ----------------------------------------------------------------------------
# Stage 1: feature transform  t = (norm * x) @ W_padded   -> bf16 (N_cols_pad, C_pad)
# ----------------------------------------------------------------------------
def _feat_transform_kernel(*refs, has_norm):
    if has_norm:
        x_ref, norm_ref, w_ref, t_ref = refs
        xv = x_ref[...] * norm_ref[...]
    else:
        x_ref, w_ref, t_ref = refs
        xv = x_ref[...]
    t_ref[...] = jnp.dot(
        xv, w_ref[...], preferred_element_type=jnp.float32
    ).astype(t_ref.dtype)


def _feat_transform(x_p, w_p, norm_p, *, out_dtype):
    n_rows_pad, c_in = x_p.shape
    c_pad = w_p.shape[1]
    has_norm = norm_p is not None
    tm1 = _stage1_row_tile(n_rows_pad)

    in_specs = [pl.BlockSpec((tm1, c_in), lambda i: (i, 0))]
    operands = [x_p]
    if has_norm:
        in_specs.append(pl.BlockSpec((tm1, 1), lambda i: (i, 0)))
        operands.append(norm_p)
    in_specs.append(pl.BlockSpec((c_in, c_pad), lambda i: (0, 0)))
    operands.append(w_p)

    kernel = functools.partial(_feat_transform_kernel, has_norm=has_norm)
    return pl.pallas_call(
        kernel,
        out_shape=jax.ShapeDtypeStruct((n_rows_pad, c_pad), out_dtype),
        grid=(n_rows_pad // tm1,),
        in_specs=in_specs,
        out_specs=pl.BlockSpec((tm1, c_pad), lambda i: (i, 0)),
        compiler_params=pltpu.CompilerParams(
            dimension_semantics=("parallel",)),
    )(*operands)


# ----------------------------------------------------------------------------
# Stage 2: out = norm * (adj @ t) + bias  (+ ReLU), tiled accumulator kernel
# ----------------------------------------------------------------------------
def _aggregate_kernel(*refs, has_norm, has_bias, apply_relu, use_scratch,
                      t_resident, tk):
    adj_ref, t_ref = refs[0], refs[1]
    idx = 2
    norm_ref = bias_ref = None
    if has_norm:
        norm_ref = refs[idx]
        idx += 1
    if has_bias:
        bias_ref = refs[idx]
        idx += 1
    o_ref = refs[idx]
    idx += 1
    acc_ref = refs[idx] if use_scratch else o_ref   # f32 out -> accumulate in place

    k = pl.program_id(1)

    @pl.when(k == 0)
    def _init():
        acc_ref[...] = jnp.zeros_like(acc_ref)

    # int8 storage -> bf16 MXU operand (exact for 0/1 entries; accumulation f32).
    adj_tile = adj_ref[...].astype(jnp.float32).astype(jnp.bfloat16)
    if t_resident:
        off = pl.multiple_of(k * tk, tk)
        t_tile = t_ref[pl.ds(off, tk), :]
    else:
        t_tile = t_ref[...]
    acc_ref[...] += jnp.dot(adj_tile, t_tile, preferred_element_type=jnp.float32)

    @pl.when(k == pl.num_programs(1) - 1)
    def _finalize():
        y = acc_ref[...]
        if has_norm:
            y = y * norm_ref[...]
        if has_bias:
            y = y + bias_ref[...]
        if apply_relu:
            y = jnp.maximum(y, 0.0)
        o_ref[...] = y.astype(o_ref.dtype)
        # TODO(synk): optional further win — fuse the next layer's (y*norm)@W_next
        # into this finalize to skip the standalone stage-1 call for layer 2.


def graph_conv(x, adj, weight, bias=None, norm=None, activation=None,
               *, adj_prepped=None, tm=None, tk=None):
    """Pallas implementation of GraphConv.forward().

    x: (N, C_in), adj: (N, N) dense 0/1 adjacency, weight: (C_in, C_out),
    bias: (C_out,) or None, norm: (N, 1) or None, activation: None | "relu".
    adj_prepped: optional pre-padded int8 adjacency from prep_adjacency()
    (hoists the O(N^2) pad+cast pass out of the per-layer call).
    Returns (N, C_out).
    """
    n, c_in = x.shape
    c_out = weight.shape[1]
    out_dtype = x.dtype

    has_norm = norm is not None
    has_bias = bias is not None
    apply_relu = (activation == "relu")

    d_tm, d_tk = _choose_tiles(n)
    tm = d_tm if tm is None else tm
    tk = d_tk if tk is None else tk

    # Independent row / col padding (at most one spare tile per axis).
    n_rows_pad = _round_up(n, tm)
    n_cols_pad = _round_up(n, tk)
    c_pad = _round_up(c_out, 128)   # lane-dense output / full MXU columns

    if adj_prepped is None:
        adj_prepped = prep_adjacency(adj, tm, tk)
    assert adj_prepped.shape == (n_rows_pad, n_cols_pad)
    assert adj_prepped.dtype == jnp.int8

    x_p = jnp.pad(x.astype(jnp.float32), ((0, n_cols_pad - n), (0, 0)))
    w_p = jnp.pad(weight.astype(jnp.float32), ((0, 0), (0, c_pad - c_out)))
    norm1_p = norm2_p = None
    if has_norm:
        norm_f = jnp.asarray(norm, jnp.float32).reshape(n, 1)
        norm1_p = jnp.pad(norm_f, ((0, n_cols_pad - n), (0, 0)))   # stage-1 rows
        norm2_p = jnp.pad(norm_f, ((0, n_rows_pad - n), (0, 0)))   # stage-2 rows
    bias_p = None
    if has_bias:
        bias_p = jnp.pad(jnp.asarray(bias, jnp.float32).reshape(1, c_out),
                         ((0, 0), (0, c_pad - c_out)))

    # Stage 1: t = (norm * x) @ W, hoisted out of the adj reduction loop.
    # bf16 storage of t is the dominant precision term (adj entries are exact).
    t = _feat_transform(x_p, w_p, norm1_p, out_dtype=jnp.bfloat16)

    # Keep t fully VMEM-resident when small (single HBM read instead of one per
    # row tile); fall back to the streamed K-panel spec for very large graphs.
    t_bytes = n_cols_pad * c_pad * 2
    t_resident = t_bytes <= 8 * 1024 * 1024

    use_scratch = (jnp.dtype(out_dtype) != jnp.dtype(jnp.float32))

    in_specs = [pl.BlockSpec((tm, tk), lambda i, k: (i, k))]      # adj panel (int8)
    operands = [adj_prepped]
    if t_resident:
        in_specs.append(pl.BlockSpec((n_cols_pad, c_pad), lambda i, k: (0, 0)))
    else:
        in_specs.append(pl.BlockSpec((tk, c_pad), lambda i, k: (k, 0)))
    operands.append(t)
    if has_norm:
        in_specs.append(pl.BlockSpec((tm, 1), lambda i, k: (i, 0)))
        operands.append(norm2_p)
    if has_bias:
        in_specs.append(pl.BlockSpec((1, c_pad), lambda i, k: (0, 0)))
        operands.append(bias_p)

    out_bytes = jnp.dtype(out_dtype).itemsize
    t_buf_bytes = t_bytes if t_resident else 2 * tk * c_pad * 2
    vmem_bytes = (
        2 * tm * tk * 1                      # adj double buffer (int8)
        + t_buf_bytes                        # t buffer(s)
        + 2 * tm * c_pad * out_bytes         # output double buffer
        + (tm * c_pad * 4 if use_scratch else 0)
        + 2 * tm * 4 + 2 * 8 * c_pad * 4     # norm / bias buffers (padded)
    )
    # Stay well under v7x's 64 MiB per-TC VMEM; raise above the default when needed.
    vmem_limit = int(min(48 * 1024 * 1024,
                         max(32 * 1024 * 1024, 2 * vmem_bytes)))

    cost = pl.CostEstimate(
        flops=2 * n_rows_pad * n_cols_pad * c_pad,
        transcendentals=0,
        bytes_accessed=(n_rows_pad * n_cols_pad * 1       # adj (int8)
                        + n_cols_pad * c_pad * 2          # t (bf16)
                        + n_rows_pad * c_pad * out_bytes),
    )

    kernel = functools.partial(
        _aggregate_kernel,
        has_norm=has_norm, has_bias=has_bias, apply_relu=apply_relu,
        use_scratch=use_scratch, t_resident=t_resident, tk=tk)

    scratch_shapes = [pltpu.VMEM((tm, c_pad), jnp.float32)] if use_scratch else []

    out_p = pl.pallas_call(
        kernel,
        out_shape=jax.ShapeDtypeStruct((n_rows_pad, c_pad), out_dtype),
        grid=(n_rows_pad // tm, n_cols_pad // tk),   # reduction (K) axis last
        in_specs=in_specs,
        out_specs=pl.BlockSpec((tm, c_pad), lambda i, k: (i, 0)),
        scratch_shapes=scratch_shapes,
        compiler_params=pltpu.CompilerParams(
            dimension_semantics=("parallel", "arbitrary"),
            vmem_limit_bytes=vmem_limit),
        cost_estimate=cost,
    )(*operands)

    return out_p[:n, :c_out]


def gcn_forward(adj, x, params, norm):
    """GCN.forward: conv1 -> ReLU -> conv2 -> mean over nodes."""
    n = x.shape[0]
    tm, tk = _choose_tiles(n)
    # Hoisted once per forward: O(N^2) pad + int8 cast, shared by both layers.
    adj_prepped = prep_adjacency(adj, tm, tk)

    h = graph_conv(x, adj, params["conv1.weight"], bias=params["conv1.bias"],
                   norm=norm, activation="relu",
                   adj_prepped=adj_prepped, tm=tm, tk=tk)
    h = graph_conv(h, adj, params["conv2.weight"], bias=params["conv2.bias"],
                   norm=norm, activation=None,
                   adj_prepped=adj_prepped, tm=tm, tk=tk)
    # TODO(synk): dgl.mean_nodes readout is a trivial (N, num_classes) mean;
    # left to plain XLA rather than a dedicated Pallas kernel.
    return jnp.mean(h, axis=0)


if __name__ == "__main__":
    key = jax.random.PRNGKey(0)
    k1, k2, k3, k4, k5, k6 = jax.random.split(key, 6)

    N, IN_FEATS, H_FEATS, NUM_CLASSES = 128, 32, 16, 2

    x = jax.random.normal(k1, (N, IN_FEATS), dtype=jnp.float32)
    adj = (jax.random.uniform(k2, (N, N)) < 0.1).astype(jnp.float32)
    adj = jnp.maximum(adj, jnp.eye(N, dtype=jnp.float32))   # self-loops (0/1 entries)
    deg = jnp.sum(adj, axis=1, keepdims=True)
    norm = jax.lax.rsqrt(deg)                               # (N, 1)

    # Deterministic "parameters" in place of a checkpoint.
    params = {
        "conv1.weight": 0.1 * jax.random.normal(k3, (IN_FEATS, H_FEATS), jnp.float32),
        "conv1.bias": 0.1 * jax.random.normal(k4, (H_FEATS,), jnp.float32),
        "conv2.weight": 0.1 * jax.random.normal(k5, (H_FEATS, NUM_CLASSES), jnp.float32),
        "conv2.bias": 0.1 * jax.random.normal(k6, (NUM_CLASSES,), jnp.float32),
    }

    out = gcn_forward(adj, x, params, norm)
    out = jax.block_until_ready(out)

    # Plain-JAX f32 reference of the same Relay graph.
    def ref_layer(h, w, b, act):
        y = norm * (adj @ ((norm * h) @ w)) + b.reshape(1, -1)
        return jnp.maximum(y, 0.0) if act else y

    h_ref = ref_layer(x, params["conv1.weight"], params["conv1.bias"], True)
    h_ref = ref_layer(h_ref, params["conv2.weight"], params["conv2.bias"], False)
    ref = jnp.mean(h_ref, axis=0)

    assert out.shape == (NUM_CLASSES,)
    # Tolerance reflects the bf16 storage of t = (norm*x)@W (adj is exact in int8).
    assert jnp.allclose(out, ref, atol=2e-2, rtol=2e-2), (out, ref)

    # Also check a single GraphConv layer end-to-end (standalone prep path).
    h1 = graph_conv(x, adj, params["conv1.weight"], bias=params["conv1.bias"],
                    norm=norm, activation="relu")
    h1 = jax.block_until_ready(h1)
    h1_ref = ref_layer(x, params["conv1.weight"], params["conv1.bias"], True)
    assert h1.shape == (N, H_FEATS)
    assert jnp.allclose(h1, h1_ref, atol=2e-2, rtol=2e-2)

    print("KERNEL_OK")
</pallas_src>

<mosaic_0001>
module attributes {stable_mosaic.version = 11 : i64} {
  func.func @_feat_transform_kernel(%arg0: i32, %arg1: memref<128x32xf32, #tpu.memory_space<vmem>>, %arg2: memref<128x1xf32, #tpu.memory_space<vmem>>, %arg3: memref<32x128xf32, #tpu.memory_space<vmem>>, %arg4: memref<128x128xbf16, #tpu.memory_space<vmem>>) attributes {dimension_semantics = [#tpu.dimension_semantics<parallel>], iteration_bounds = array<i64: 1>, scalar_prefetch = 0 : i64, scratch_operands = 0 : i64, tpu.core_type = #tpu.core_type<tc>, window_params = [{transform_indices = @transform_0, window_bounds = array<i64: 128, 32>}, {transform_indices = @transform_1, window_bounds = array<i64: 128, 1>}, {pipeline_mode = #tpu.pipeline_mode<synchronous>, transform_indices = @transform_2, window_bounds = array<i64: 32, 128>}, {transform_indices = @transform_3, window_bounds = array<i64: 128, 128>}]} {
    %c0 = arith.constant 0 : index
    %c0_0 = arith.constant 0 : index
    %0 = vector.load %arg1[%c0, %c0_0] : memref<128x32xf32, #tpu.memory_space<vmem>>, vector<128x32xf32>
    %c0_1 = arith.constant 0 : index
    %c0_2 = arith.constant 0 : index
    %1 = vector.load %arg2[%c0_1, %c0_2] : memref<128x1xf32, #tpu.memory_space<vmem>>, vector<128x1xf32>
    %2 = vector.broadcast %1 : vector<128x1xf32> to vector<128x32xf32>
    %3 = arith.mulf %0, %2 : vector<128x32xf32>
    %c0_3 = arith.constant 0 : index
    %c0_4 = arith.constant 0 : index
    %4 = vector.load %arg3[%c0_3, %c0_4] : memref<32x128xf32, #tpu.memory_space<vmem>>, vector<32x128xf32>
    %cst = arith.constant dense<0.000000e+00> : vector<128x128xf32>
    %5 = tpu.matmul %3, %4, %cst {dimension_numbers = #tpu.dot_dimension_numbers<[1], [0], [0], [1], [0, 0, 1, 1], [], []>} : vector<128x32xf32>, vector<32x128xf32>, vector<128x128xf32> -> vector<128x128xf32>
    %6 = arith.truncf %5 : vector<128x128xf32> to vector<128x128xbf16>
    %c0_5 = arith.constant 0 : index
    %c0_6 = arith.constant 0 : index
    %7 = vector.load %arg4[%c0_5, %c0_6] : memref<128x128xbf16, #tpu.memory_space<vmem>>, vector<128x128xbf16>
    tpu.vector_store %arg4[%c0_5, %c0_6], %6 {strides = array<i32>} : memref<128x128xbf16, #tpu.memory_space<vmem>>, vector<128x128xbf16>,
    return
  }
  func.func @transform_0(%arg0: i32) -> (i32, i32) {
    %c0_i32 = arith.constant 0 : i32
    %c0_i32_0 = arith.constant 0 : i32
    return %arg0, %c0_i32 : i32, i32
  }
  func.func @transform_1(%arg0: i32) -> (i32, i32) {
    %c0_i32 = arith.constant 0 : i32
    %c0_i32_0 = arith.constant 0 : i32
    return %arg0, %c0_i32 : i32, i32
  }
  func.func @transform_2(%arg0: i32) -> (i32, i32) {
    %c0_i32 = arith.constant 0 : i32
    %c0_i32_0 = arith.constant 0 : i32
    %c0_i32_1 = arith.constant 0 : i32
    return %c0_i32, %c0_i32_0 : i32, i32
  }
  func.func @transform_3(%arg0: i32) -> (i32, i32) {
    %c0_i32 = arith.constant 0 : i32
    %c0_i32_0 = arith.constant 0 : i32
    return %arg0, %c0_i32 : i32, i32
  }
}

</mosaic_0001>

<bundles_post_ra>
// kernel: tpu_custom_call.1
= control target key start
LH: loop header
LB: loop body
LE: loop exit
PB: predicated region body
PF: predicated region fallthrough
CT: control target
= control target key end

     0   :  { %v620_v2 = vmov 0   ;;  %s771_s0 = inlined_call_operand.vmem [shape: f32[128,32], index: 0, kind: input, shape index: {}]   ;;  %s772_s1 = inlined_call_operand.vmem [shape: f32[128,1], index: 1, kind: input, shape index: {}]   ;;  %s773_s2 = inlined_call_operand.vmem [shape: f32[32,128], index: 2, kind: input, shape index: {}]   ;;  %s774_s3 = inlined_call_operand.hbm [shape: bf16[128,128], index: 3, kind: output, shape index: {}]  }
   0x1   :  { %v32_v0 = vld [vmem:[%s772_s1 + $0x8] sm:$0xff]  ;;  %v31_v1 = vld [vmem:[%s772_s1] sm:$0xff]  ;;  %597 = vset.pattern.permute.xlu1 %v620_v2  ;;  %596 = vset.pattern.permute.xlu0 %v620_v2  ;;  %v146_v5 = vld [vmem:[%s773_s2 + $0x18] sm:$0xff] }
   0x2   :  { %54 = vperm.xlu1 %597, %v32_v0   ;;  %49 = vperm.xlu0 %596, %v31_v1   ;;  %v40_v3 = vld [vmem:[%s772_s1 + $0x48] sm:$0xff]  ;;  %v39_v4 = vld [vmem:[%s772_s1 + $0x40] sm:$0xff]  ;;  %v145_v6 = vld [vmem:[%s773_s2 + $0x10] sm:$0xff] }
   0x3   :  { %v41_v7 = vld [vmem:[%s772_s1 + $0x50] sm:$0xff]  ;;  %552 = vmatprep.subr.mxu0 %v146_v5  ;;  %584 = vmatprep.subr.mxu1 %v146_v5 }
   0x4   :  { %v33_v8 = vld [vmem:[%s772_s1 + $0x10] sm:$0xff]  ;;  %553 = vmatpush3.msra.mxu0 %v146_v5  ;;  %588 = vmatpush3.msra.mxu1 %v146_v5 }
   0x6   :  { %94 = vperm.xlu1 %597, %v40_v3   ;;  %89 = vperm.xlu0 %596, %v39_v4  }
   0x7   :  { %8 = vsyncpa [#allocation3], 0  ;;  %554 = vmatprep.subr.mxu0 %v145_v6  ;;  %v144_v9 = vld [vmem:[%s773_s2 + $0x8] sm:$0xff]  ;;  %585 = vmatprep.subr.mxu1 %v145_v6  ;;  %v42_v10 = vld [vmem:[%s772_s1 + $0x58] sm:$0xff]  ;;  %vm147_vm0 = vcmask 261120  }
   0x8   :  { %v34_v11 = vld [vmem:[%s772_s1 + $0x18] sm:$0xff]  ;;  %555 = vmatpush3.msra.mxu0 %v145_v6  ;;  %589 = vmatpush3.msra.mxu1 %v145_v6  ;;  %v143_v12 = vld [vmem:[%s773_s2] sm:$0xff]  ;;  %v44_v15 = vld [vmem:[%s772_s1 + $0x68] sm:$0xff] }
   0x9   :  { %556 = vmatprep.subr.mxu0 %v144_v9  ;;  %586 = vmatprep.subr.mxu1 %v144_v9  ;;  %v43_v13 = vld [vmem:[%s772_s1 + $0x60] sm:$0xff]  ;;  %v36_v16 = vld [vmem:[%s772_s1 + $0x28] sm:$0xff]  ;;  %v45_v17 = vld [vmem:[%s772_s1 + $0x70] sm:$0xff] }
   0xa   :  { %99 = vperm.xlu1 %597, %v41_v7   ;;  %59 = vperm.xlu0 %596, %v33_v8   ;;  %v35_v14 = vld [vmem:[%s772_s1 + $0x20] sm:$0xff]  ;;  %v37_v18 = vld [vmem:[%s772_s1 + $0x30] sm:$0xff]  ;;  %v46_v19 = vld [vmem:[%s772_s1 + $0x78] sm:$0xff] }
   0xb   :  { %557 = vmatpush3.msra.mxu0 %v144_v9  ;;  %590 = vmatpush3.msra.mxu1 %v144_v9  ;;  %v38_v20 = vld [vmem:[%s772_s1 + $0x38] sm:$0xff]  ;;  %v16_v21 = vld [vmem:[%s771_s0 + $0x8] sm:$0xff]  ;;  %v15_v22 = vld [vmem:[%s771_s0] sm:$0xff] }
   0xc   :  { %558 = vmatprep.subr.mxu0 %v143_v12  ;;  %587 = vmatprep.subr.mxu1 %v143_v12  ;;  %v24_v27 = vld [vmem:[%s771_s0 + $0x48] sm:$0xff]  ;;  %v23_v28 = vld [vmem:[%s771_s0 + $0x40] sm:$0xff]  ;;  %v25_v33 = vld [vmem:[%s771_s0 + $0x50] sm:$0xff] }
   0xd   :  { %559 = vmatpush3.msra.mxu0 %v143_v12  ;;  %591 = vmatpush3.msra.mxu1 %v143_v12  ;;  %v17_v34 = vld [vmem:[%s771_s0 + $0x10] sm:$0xff]  ;;  %v26_v39 = vld [vmem:[%s771_s0 + $0x58] sm:$0xff]  ;;  %v27_v45 = vld [vmem:[%s771_s0 + $0x60] sm:$0xff] }
   0xe   :  { %104 = vperm.xlu1 %597, %v42_v10   ;;  %64 = vperm.xlu0 %596, %v34_v11   ;;  %v18_v40 = vld [vmem:[%s771_s0 + $0x18] sm:$0xff]  ;;  %v19_v46 = vld [vmem:[%s771_s0 + $0x20] sm:$0xff]  ;;  %v28_v51 = vld [vmem:[%s771_s0 + $0x68] sm:$0xff] }
   0xf   :  { %v20_v52 = vld [vmem:[%s771_s0 + $0x28] sm:$0xff]  ;;  %v29_v57 = vld [vmem:[%s771_s0 + $0x70] sm:$0xff]  ;;  %v30_v63 = vld [vmem:[%s771_s0 + $0x78] sm:$0xff] }
  0x10   :  { %v21_v58 = vld [vmem:[%s771_s0 + $0x30] sm:$0xff]  ;;  %v22_v0 = vld [vmem:[%s771_s0 + $0x38] sm:$0xff]  ;;  %s621_s0 = smov [#allocation2]  }
  0x11   :  { %s426_s27 = sshll.u32 %s621_s0, 4  ;;  %s427_s27 = int_to_ptr.vmem [resolvable:$true] %s426_s27 }
  0x12   :  { %109 = vperm.xlu1 %597, %v43_v13   ;;  %69 = vperm.xlu0 %596, %v35_v14   ;;  %s598_s28 = scalar_lea.vmem %s427_s27, 1024  ;;  %p603_p1 = scmp.lt.s32.totalorder %s427_s27, %s427_s27 }
  0x13   :  { %p599_p0 = scmp.ne.s32.totalorder %s427_s27, %s598_s28  ;;  %p604_p2 = scmp.lt.s32.totalorder %s598_s28, %s598_s28 }
  0x15   :  { %p605_p3 = por %p604_p2, %p603_p1 }
  0x16   :  { %114 = vperm.xlu1 %597, %v44_v15   ;;  %74 = vperm.xlu0 %596, %v36_v16  }
  0x17   :  { %p606_p4 = pnand %p605_p3, %p599_p0 }
  0x1a   :  { %119 = vperm.xlu1 %597, %v45_v17   ;;  %79 = vperm.xlu0 %596, %v37_v18  }
  0x1e   :  { %124 = vperm.xlu1 %597, %v46_v19   ;;  %84 = vperm.xlu0 %596, %v38_v20  }
  0x7d   :  { %v55_v23 = vpop.permute.xlu1 %54  ;;  %v50_v24 = vpop.permute.xlu0 %49 }
  0x7e   :  { %v128_v25 = vmul.f32 %v55_v23, %v16_v21  ;;  %v127_v26 = vmul.f32 %v50_v24, %v15_v22 }
  0x80   :  { %560 = vmatprep.mubr.msk.f32.mxu0 %vm147_vm0, %v127_v26 }
  0x81   :  { %v95_v29 = vpop.permute.xlu1 %94  ;;  %v90_v30 = vpop.permute.xlu0 %89  ;;  %561 = vmatmul.mubr.msk.f32.vlgmr.msra.gmra.mxu0 %vm147_vm0, %v128_v25 }
  0x82   :  { %v136_v31 = vmul.f32 %v95_v29, %v24_v27  ;;  %v135_v32 = vmul.f32 %v90_v30, %v23_v28 }
  0x84   :  { %572 = vmatprep.mubr.msk.f32.mxu1 %vm147_vm0, %v135_v32 }
  0x85   :  { %v100_v35 = vpop.permute.xlu1 %99  ;;  %v60_v36 = vpop.permute.xlu0 %59  ;;  %573 = vmatmul.mubr.msk.f32.vlgmr.msra.gmra.mxu1 %vm147_vm0, %v136_v31 }
  0x86   :  { %v137_v37 = vmul.f32 %v100_v35, %v25_v33  ;;  %v129_v38 = vmul.f32 %v60_v36, %v17_v34 }
  0x88   :  { %563 = vmatprep.mubr.msk.f32.mxu0 %vm147_vm0, %v129_v38  ;;  %575 = vmatprep.mubr.msk.f32.mxu1 %vm147_vm0, %v137_v37 }
  0x89   :  { %v105_v41 = vpop.permute.xlu1 %104  ;;  %v65_v42 = vpop.permute.xlu0 %64 }
  0x8a   :  { %v138_v43 = vmul.f32 %v105_v41, %v26_v39  ;;  %v130_v44 = vmul.f32 %v65_v42, %v18_v40 }
  0x8c   :  { %564 = vmatmul.mubr.msk.f32.gmra.mxu0 %vm147_vm0, %v130_v44  ;;  %576 = vmatmul.mubr.msk.f32.gmra.mxu1 %vm147_vm0, %v138_v43 }
  0x8d   :  { %v110_v47 = vpop.permute.xlu1 %109  ;;  %v70_v48 = vpop.permute.xlu0 %69 }
  0x8e   :  { %v139_v49 = vmul.f32 %v110_v47, %v27_v45  ;;  %v131_v50 = vmul.f32 %v70_v48, %v19_v46 }
  0x90   :  { %566 = vmatprep.mubr.msk.f32.mxu0 %vm147_vm0, %v131_v50  ;;  %578 = vmatprep.mubr.msk.f32.mxu1 %vm147_vm0, %v139_v49 }
  0x91   :  { %v115_v53 = vpop.permute.xlu1 %114  ;;  %v75_v54 = vpop.permute.xlu0 %74 }
  0x92   :  { %v140_v55 = vmul.f32 %v115_v53, %v28_v51  ;;  %v132_v56 = vmul.f32 %v75_v54, %v20_v52 }
  0x94   :  { %567 = vmatmul.mubr.msk.f32.gmra.mxu0 %vm147_vm0, %v132_v56  ;;  %579 = vmatmul.mubr.msk.f32.gmra.mxu1 %vm147_vm0, %v140_v55 }
  0x95   :  { %v120_v59 = vpop.permute.xlu1 %119  ;;  %v80_v60 = vpop.permute.xlu0 %79 }
  0x96   :  { %v141_v61 = vmul.f32 %v120_v59, %v29_v57  ;;  %v133_v62 = vmul.f32 %v80_v60, %v21_v58 }
  0x98   :  { %569 = vmatprep.mubr.msk.f32.mxu0 %vm147_vm0, %v133_v62  ;;  %581 = vmatprep.mubr.msk.f32.mxu1 %vm147_vm0, %v141_v61 }
  0x99   :  { %v125_v1 = vpop.permute.xlu1 %124  ;;  %v85_v2 = vpop.permute.xlu0 %84 }
  0x9a   :  { %v142_v3 = vmul.f32 %v125_v1, %v30_v63  ;;  %v134_v4 = vmul.f32 %v85_v2, %v22_v0 }
  0x9c   :  { %570 = vmatmul.mubr.msk.f32.gmra.mxu0 %vm147_vm0, %v134_v4  ;;  %582 = vmatmul.mubr.msk.f32.gmra.mxu1 %vm147_vm0, %v142_v3 }
 0x141   :  { %v562_v5 = vpop.f32.mrf.mxu0 }
 0x143   :  { %v262_v6 = vpop.f32.mrf.mxu0 }
 0x144   :  { %v488_v7 = vpack.c.bf16 %v562_v5, %v262_v6 }
 0x145   :  { %v574_v8 = vpop.f32.mrf.mxu1 }
 0x146   :  { %489 = vst [vmem:[#allocation2] sm:$0xff] %v488_v7  }
 0x147   :  { %v302_v9 = vpop.f32.mrf.mxu1 }
 0x148   :  { %v508_v10 = vpack.c.bf16 %v574_v8, %v302_v9 }
 0x14a   :  { %528 = vst [vmem:[#allocation2 + $0x20] sm:$0xff] %v508_v10  }
 0x14c   :  { %v565_v11 = vpop.f32.mrf.mxu0  ;;  %v577_v12 = vpop.f32.mrf.mxu1 }
 0x14e   :  { %v272_v13 = vpop.f32.mrf.mxu0  ;;  %v312_v14 = vpop.f32.mrf.mxu1 }
 0x14f   :  { %v493_v15 = vpack.c.bf16 %v565_v11, %v272_v13  ;;  %v513_v16 = vpack.c.bf16 %v577_v12, %v312_v14 }
 0x151   :  { %525 = vst [vmem:[#allocation2 + $0x8] sm:$0xff] %v493_v15   ;;  %529 = vst [vmem:[#allocation2 + $0x28] sm:$0xff] %v513_v16  }
 0x154   :  { %v568_v17 = vpop.f32.mrf.mxu0  ;;  %v580_v18 = vpop.f32.mrf.mxu1 }
 0x156   :  { %v282_v19 = vpop.f32.mrf.mxu0  ;;  %v322_v20 = vpop.f32.mrf.mxu1 }
 0x157   :  { %v498_v21 = vpack.c.bf16 %v568_v17, %v282_v19  ;;  %v518_v22 = vpack.c.bf16 %v580_v18, %v322_v20 }
 0x159   :  { %526 = vst [vmem:[#allocation2 + $0x10] sm:$0xff] %v498_v21   ;;  %530 = vst [vmem:[#allocation2 + $0x30] sm:$0xff] %v518_v22  }
 0x15c   :  { %v571_v23 = vpop.f32.mrf.mxu0  ;;  %v583_v24 = vpop.f32.mrf.mxu1 }
 0x15e   :  { %v292_v25 = vpop.f32.mrf.mxu0  ;;  %v332_v26 = vpop.f32.mrf.mxu1 }
 0x15f   :  { %v503_v27 = vpack.c.bf16 %v571_v23, %v292_v25  ;;  %v523_v28 = vpack.c.bf16 %v583_v24, %v332_v26 }
 0x161   :  { %527 = vst [vmem:[#allocation2 + $0x18] sm:$0xff] %v503_v27   ;;  %531 = vst [vmem:[#allocation2 + $0x38] sm:$0xff] %v523_v28  }
 0x162   :  { %609 = shalt.err (!%p606_p4)
}
 0x163   :  { %s622_s29 = smov 64   ;;  %s623_s1 = smov 4  }
 0x164   :  { %432 = dma.vmem_to_hbm [thread:$0]  %s427_s27, 1024, %s774_s3, [#allocation3], %s622_s29, %s622_s29, %s623_s1  }
 0x165   :  { %618 = dma.done.wait [#allocation3], 1024  }
 0x166   :  { %619 = vsyncadd [#allocation3], 4294966272 }
 0x167   :  { %436 = vsyncpa [#allocation3], 1 }

</bundles_post_ra>
